<compile_context>
chip_gen: v6e
topology: v6e:2x2x1
jax: 0.10.0
libtpu: 0.0.40
codegen_flags: <defaults>
</compile_context>

<pallas_src>
import math

import jax
import jax.numpy as jnp
from jax.experimental import pallas as pl
from jax.experimental.pallas import tpu as pltpu

NUM_GROUPS = 3
BN_EPS = 1e-3
KK = 5            # fused im2col window (covers the 1x1, 3x3 and 5x5 branches)
LANE = 128
DEFAULT_TM = 512  # columns (flattened-spatial lanes) processed per grid step


def _round_up(x, m):
    return (x + m - 1) // m * m


# ----------------------------------------------------------------------------
# In-kernel helpers
# ----------------------------------------------------------------------------
def _mish(xn, approx):
    """mish(x) = x * tanh(softplus(x)) = x * t/(t+2), t = e^x (e^x + 2)."""
    e = jnp.exp(jnp.minimum(xn, 20.0))   # for xn > 20 the ratio is 1.0 in f32
    t = e * (e + 2.0)
    if approx:
        return xn * t * pl.reciprocal(t + 2.0, approx=True)
    return xn * (t / (t + 2.0))


# ----------------------------------------------------------------------------
# Kernel 1: fused conv11/conv21/conv31 (one matmul over the shared 5x5 im2col)
#           with BatchNorm batch-statistics accumulated in the epilogue.
# ----------------------------------------------------------------------------
def _conv_stats_kernel(xcol_ref, w_ref, y_ref, sum_ref, ssq_ref):
    @pl.when(pl.program_id(0) == 0)
    def _():
        sum_ref[...] = jnp.zeros_like(sum_ref)
        ssq_ref[...] = jnp.zeros_like(ssq_ref)

    y = jnp.dot(w_ref[...], xcol_ref[...], preferred_element_type=jnp.float32)
    y_ref[...] = y
    sum_ref[...] += jnp.sum(y, axis=1, keepdims=True)
    ssq_ref[...] += jnp.sum(y * y, axis=1, keepdims=True)


def fused_conv_stats(xcolT, wT, tm):
    K, Mp = xcolT.shape
    P = wT.shape[0]
    return pl.pallas_call(
        _conv_stats_kernel,
        out_shape=(jax.ShapeDtypeStruct((P, Mp), jnp.float32),
                   jax.ShapeDtypeStruct((P, 1), jnp.float32),
                   jax.ShapeDtypeStruct((P, 1), jnp.float32)),
        grid=(Mp // tm,),
        in_specs=[pl.BlockSpec((K, tm), lambda i: (0, i)),
                  pl.BlockSpec((P, K), lambda i: (0, 0))],
        out_specs=(pl.BlockSpec((P, tm), lambda i: (0, i)),
                   pl.BlockSpec((P, 1), lambda i: (0, 0)),
                   pl.BlockSpec((P, 1), lambda i: (0, 0))),
        compiler_params=pltpu.CompilerParams(
            dimension_semantics=("arbitrary",)),   # stats accumulate over M tiles
    )(xcolT, wT)


# ----------------------------------------------------------------------------
# Kernel 2: BN(batch stats)+mish of x41 fused into the grouped 1x1x1 conv,
#           with the next BatchNorm's batch statistics in the epilogue.
# ----------------------------------------------------------------------------
def _make_bn_mish_conv_stats_kernel(m_valid, tm, need_mask):
    def kernel(x_ref, scale_ref, shift_ref, w_ref, y_ref, sum_ref, ssq_ref):
        i = pl.program_id(0)

        @pl.when(i == 0)
        def _():
            sum_ref[...] = jnp.zeros_like(sum_ref)
            ssq_ref[...] = jnp.zeros_like(ssq_ref)

        xn = x_ref[...] * scale_ref[...] + shift_ref[...]
        act = _mish(xn, approx=False)
        if need_mask:
            col = i * tm + jax.lax.broadcasted_iota(jnp.int32, act.shape, 1)
            act = jnp.where(col < m_valid, act, 0.0)   # keep padding out of stats
        y = jnp.dot(w_ref[...], act.astype(jnp.bfloat16),
                    preferred_element_type=jnp.float32)
        y_ref[...] = y
        sum_ref[...] += jnp.sum(y, axis=1, keepdims=True)
        ssq_ref[...] += jnp.sum(y * y, axis=1, keepdims=True)
    return kernel


def bn_mish_conv_stats(x41T, scale, shift, w4T, m_valid, tm):
    P, Mp = x41T.shape
    C = w4T.shape[0]
    kernel = _make_bn_mish_conv_stats_kernel(m_valid, tm, need_mask=(Mp != m_valid))
    return pl.pallas_call(
        kernel,
        out_shape=(jax.ShapeDtypeStruct((C, Mp), jnp.float32),
                   jax.ShapeDtypeStruct((C, 1), jnp.float32),
                   jax.ShapeDtypeStruct((C, 1), jnp.float32)),
        grid=(Mp // tm,),
        in_specs=[pl.BlockSpec((P, tm), lambda i: (0, i)),
                  pl.BlockSpec((P, 1), lambda i: (0, 0)),
                  pl.BlockSpec((P, 1), lambda i: (0, 0)),
                  pl.BlockSpec((C, P), lambda i: (0, 0))],
        out_specs=(pl.BlockSpec((C, tm), lambda i: (0, i)),
                   pl.BlockSpec((C, 1), lambda i: (0, 0)),
                   pl.BlockSpec((C, 1), lambda i: (0, 0))),
        compiler_params=pltpu.CompilerParams(
            dimension_semantics=("arbitrary",)),
    )(x41T, scale, shift, w4T)


# ----------------------------------------------------------------------------
# Kernel 3: final BN (batch stats) + mish, elementwise, tiled and lane-dense.
# ----------------------------------------------------------------------------
def _bn_mish_kernel(x_ref, scale_ref, shift_ref, o_ref):
    xn = x_ref[...] * scale_ref[...] + shift_ref[...]
    o_ref[...] = _mish(xn, approx=True)


def bn_mish(yT, scale, shift, tm):
    C, Mp = yT.shape
    return pl.pallas_call(
        _bn_mish_kernel,
        out_shape=jax.ShapeDtypeStruct((C, Mp), jnp.float32),
        grid=(Mp // tm,),
        in_specs=[pl.BlockSpec((C, tm), lambda i: (0, i)),
                  pl.BlockSpec((C, 1), lambda i: (0, 0)),
                  pl.BlockSpec((C, 1), lambda i: (0, 0))],
        out_specs=pl.BlockSpec((C, tm), lambda i: (0, i)),
        compiler_params=pltpu.CompilerParams(
            dimension_semantics=("parallel",)),    # megacore-shardable on v7x
    )(yT, scale, shift)


# ----------------------------------------------------------------------------
# Glue: grouped-conv weight packing + shared 5x5 im2col (plain JAX, trace time)
# ----------------------------------------------------------------------------
def calculate_groups(num_filters):
    n = num_filters + 1
    return [n // 2, n // 4, n - 1 - (n // 2 + n // 4)]


def make_group_weights(key, c_in, c_out, kd, kh):
    """Per-group Conv3d weights (kW = 1) matching CustomGroupedConv3d init."""
    out_groups = calculate_groups(c_out)
    cin_g = c_in // NUM_GROUPS
    keys = jax.random.split(key, NUM_GROUPS)
    bound = 1.0 / math.sqrt(cin_g * kd * kh)
    return [jax.random.uniform(keys[g], (out_groups[g], cin_g, kd, kh),
                               jnp.float32, minval=-bound, maxval=bound)
            for g in range(NUM_GROUPS)]


def pack_grouped_conv_T(WT, wlist, c_in, kd, kh, row_off, window):
    """Scatter one CustomGroupedConv3d into the transposed fused weight.

    Column index k = (ii*window + jj) * c_in + c, where (ii, jj) is the tap
    position inside the fused window x window im2col and c the input channel.
    Rows are the concatenated per-group output channels (torch.cat order).
    """
    cin_g = c_in // NUM_GROUPS
    od = (window - kd) // 2
    oh = (window - kh) // 2
    r = row_off
    for g, wg in enumerate(wlist):
        og = wg.shape[0]
        if og == 0:
            continue
        for i in range(kd):
            for j in range(kh):
                k0 = ((i + od) * window + (j + oh)) * c_in + g * cin_g
                WT = WT.at[r:r + og, k0:k0 + cin_g].set(wg[:, :, i, j])
        r += og
    return WT, r


def im2col_5x5_T(x_cfirst, tm):
    """x: (C, N, D, H, W) -> (25*C, Mpad); k = (ii*5+jj)*C + c, columns flatten
    (N, D, H, W) in order and are zero-padded to a multiple of tm."""
    # TODO(synk): form the 5x5 patches inside the kernel via halo DMAs instead
    # of materialising the 25x-expanded im2col in HBM.
    C, N, D, H, W = x_cfirst.shape
    p = KK // 2
    xp = jnp.pad(x_cfirst, ((0, 0), (0, 0), (p, p), (p, p), (0, 0)))
    cols = [xp[:, :, i:i + D, j:j + H, :] for i in range(KK) for j in range(KK)]
    patch = jnp.stack(cols, axis=0)                      # (25, C, N, D, H, W)
    M = N * D * H * W
    xcolT = patch.reshape(KK * KK * C, M)
    Mp = _round_up(M, tm)
    if Mp != M:
        xcolT = jnp.pad(xcolT, ((0, 0), (0, Mp - M)))
    return xcolT, M, Mp


def _bn_affine(s, q, count, gamma, beta):
    """Fold BatchNorm (batch stats, biased var, eps=1e-3) into scale/shift."""
    mean = s / count
    var = jnp.maximum(q / count - mean * mean, 0.0)
    scale = gamma.reshape(-1, 1) * jax.lax.rsqrt(var + BN_EPS)
    shift = beta.reshape(-1, 1) - mean * scale
    return scale, shift


# ----------------------------------------------------------------------------
# SPCB parameters + forward
# ----------------------------------------------------------------------------
def init_spcb_params(key, C):
    c_half = C // 2
    P = 3 * c_half
    k = jax.random.split(key, 4)
    w11 = make_group_weights(k[0], C, c_half, 1, 1)
    w21 = make_group_weights(k[1], C, c_half, 3, 3)
    w31 = make_group_weights(k[2], C, c_half, 5, 5)
    w4 = make_group_weights(k[3], P, C, 1, 1)

    # Fused transposed weight for the three parallel branches: rows are the
    # concatenated output channels [conv11 | conv21 | conv31].
    W1T = jnp.zeros((P, KK * KK * C), jnp.float32)
    W1T, r = pack_grouped_conv_T(W1T, w11, C, 1, 1, 0, KK)
    W1T, r = pack_grouped_conv_T(W1T, w21, C, 3, 3, r, KK)
    W1T, r = pack_grouped_conv_T(W1T, w31, C, 5, 5, r, KK)
    assert r == P

    # Grouped pointwise conv (P -> C), transposed and block-diagonal.
    W4T = jnp.zeros((C, P), jnp.float32)
    W4T, r4 = pack_grouped_conv_T(W4T, w4, P, 1, 1, 0, 1)
    assert r4 == C

    return {
        "W1T": W1T.astype(jnp.bfloat16),
        "W4T": W4T.astype(jnp.bfloat16),
        "g1": jnp.ones((P,), jnp.float32),
        "b1": jnp.zeros((P,), jnp.float32),
        "g2": jnp.ones((C,), jnp.float32),
        "b2": jnp.zeros((C,), jnp.float32),
    }


def spcb_forward_pallas(X, params, tm=DEFAULT_TM):
    """X: (N, C, D, H, W) float32 -> (N, C, D, H, W) float32."""
    N, C, D, H, W = X.shape
    M = N * D * H * W
    tm = min(tm, max(LANE, _round_up(M, LANE)))

    x_cfirst = jnp.transpose(X, (1, 0, 2, 3, 4)).astype(jnp.bfloat16)
    xcolT, M, Mp = im2col_5x5_T(x_cfirst, tm)

    # conv11 + conv21 + conv31 as one fused matmul, with BN batch stats.
    x41T, s1, q1 = fused_conv_stats(xcolT, params["W1T"], tm)
    scale1, shift1 = _bn_affine(s1, q1, M, params["g1"], params["b1"])

    # BN_mish(x41) fused into the grouped 1x1x1 conv, with BN stats of its out.
    y43T, s2, q2 = bn_mish_conv_stats(x41T, scale1, shift1, params["W4T"], M, tm)
    scale2, shift2 = _bn_affine(s2, q2, M, params["g2"], params["b2"])

    # Final BN + mish (elementwise, tiled, lane-dense).
    x43T = bn_mish(y43T, scale2, shift2, tm)

    out = x43T[:, :M].reshape(C, N, D, H, W)
    return jnp.transpose(out, (1, 0, 2, 3, 4))


# ----------------------------------------------------------------------------
# Pure-JAX reference (same math, no Pallas) for a correctness sanity check
# ----------------------------------------------------------------------------
def spcb_reference(X, params):
    N, C, D, H, W = X.shape
    M = N * D * H * W
    x_cfirst = jnp.transpose(X, (1, 0, 2, 3, 4)).astype(jnp.bfloat16)
    p = KK // 2
    xp = jnp.pad(x_cfirst, ((0, 0), (0, 0), (p, p), (p, p), (0, 0)))
    cols = [xp[:, :, i:i + D, j:j + H, :] for i in range(KK) for j in range(KK)]
    xcolT = jnp.stack(cols, axis=0).reshape(KK * KK * C, M)

    def bn_mish_ref(x, gamma, beta):
        mean = x.mean(axis=1, keepdims=True)
        var = ((x - mean) ** 2).mean(axis=1, keepdims=True)
        xn = (x - mean) * jax.lax.rsqrt(var + BN_EPS) * gamma.reshape(-1, 1) \
             + beta.reshape(-1, 1)
        return xn * jnp.tanh(jnp.logaddexp(xn, 0.0))   # x * tanh(softplus(x))

    y1 = jnp.dot(params["W1T"], xcolT, preferred_element_type=jnp.float32)
    x42 = bn_mish_ref(y1, params["g1"], params["b1"])
    y2 = jnp.dot(params["W4T"], x42.astype(jnp.bfloat16),
                 preferred_element_type=jnp.float32)
    x43 = bn_mish_ref(y2, params["g2"], params["b2"])
    return jnp.transpose(x43.reshape(C, N, D, H, W), (1, 0, 2, 3, 4))


if __name__ == "__main__":
    # Small shapes consistent with SPCB(h=8, w=8, C=6); depth/spectral dim = 4.
    N, C, D, H, W = 2, 6, 8, 8, 4          # C divisible by num_groups = 3
    key = jax.random.PRNGKey(0)
    kx, kp = jax.random.split(key)
    X = jax.random.normal(kx, (N, C, D, H, W), jnp.float32)
    params = init_spcb_params(kp, C)

    fwd = jax.jit(lambda x: spcb_forward_pallas(x, params))
    out = jax.block_until_ready(fwd(X))

    ref = spcb_reference(X, params)
    assert out.shape == (N, C, D, H, W)
    err = float(jnp.max(jnp.abs(out - ref)))
    assert jnp.allclose(out, ref, atol=1e-2, rtol=1e-2), (
        f"Pallas vs JAX reference mismatch: max abs err {err}")
    print("KERNEL_OK")
</pallas_src>

<mosaic_0001>
module attributes {stable_mosaic.version = 11 : i64} {
  func.func @_conv_stats_kernel(%arg0: i32, %arg1: memref<150x512xbf16, #tpu.memory_space<vmem>>, %arg2: memref<9x150xbf16, #tpu.memory_space<vmem>>, %arg3: memref<9x512xf32, #tpu.memory_space<vmem>>, %arg4: memref<9x1xf32, #tpu.memory_space<vmem>>, %arg5: memref<9x1xf32, #tpu.memory_space<vmem>>) attributes {dimension_semantics = [#tpu.dimension_semantics<arbitrary>], iteration_bounds = array<i64: 1>, scalar_prefetch = 0 : i64, scratch_operands = 0 : i64, tpu.core_type = #tpu.core_type<tc>, window_params = [{transform_indices = @transform_0, window_bounds = array<i64: 150, 512>}, {pipeline_mode = #tpu.pipeline_mode<synchronous>, transform_indices = @transform_1, window_bounds = array<i64: 9, 150>}, {transform_indices = @transform_2, window_bounds = array<i64: 9, 512>}, {pipeline_mode = #tpu.pipeline_mode<synchronous>, transform_indices = @transform_3, window_bounds = array<i64: 9, 1>}, {pipeline_mode = #tpu.pipeline_mode<synchronous>, transform_indices = @transform_4, window_bounds = array<i64: 9, 1>}]} {
    %c0_i32 = arith.constant 0 : i32
    %0 = arith.cmpi eq, %arg0, %c0_i32 : i32
    %1 = arith.extui %0 : i1 to i32
    %c0_i32_0 = arith.constant 0 : i32
    %2 = arith.cmpi ne, %1, %c0_i32_0 : i32
    scf.if %2 {
      %cst_16 = arith.constant 0.000000e+00 : f32
      %18 = vector.broadcast %cst_16 : f32 to vector<9x1xf32>
      %c0_17 = arith.constant 0 : index
      %c0_18 = arith.constant 0 : index
      %19 = vector.load %arg4[%c0_17, %c0_18] : memref<9x1xf32, #tpu.memory_space<vmem>>, vector<9x1xf32>
      tpu.vector_store %arg4[%c0_17, %c0_18], %18 {strides = array<i32>} : memref<9x1xf32, #tpu.memory_space<vmem>>, vector<9x1xf32>,
      %cst_19 = arith.constant 0.000000e+00 : f32
      %20 = vector.broadcast %cst_19 : f32 to vector<9x1xf32>
      %c0_20 = arith.constant 0 : index
      %c0_21 = arith.constant 0 : index
      %21 = vector.load %arg5[%c0_20, %c0_21] : memref<9x1xf32, #tpu.memory_space<vmem>>, vector<9x1xf32>
      tpu.vector_store %arg5[%c0_20, %c0_21], %20 {strides = array<i32>} : memref<9x1xf32, #tpu.memory_space<vmem>>, vector<9x1xf32>,
    } else {
    }
    %c0 = arith.constant 0 : index
    %c0_1 = arith.constant 0 : index
    %3 = vector.load %arg2[%c0, %c0_1] : memref<9x150xbf16, #tpu.memory_space<vmem>>, vector<9x150xbf16>
    %c0_2 = arith.constant 0 : index
    %c0_3 = arith.constant 0 : index
    %4 = vector.load %arg1[%c0_2, %c0_3] : memref<150x512xbf16, #tpu.memory_space<vmem>>, vector<150x512xbf16>
    %cst = arith.constant dense<0.000000e+00> : vector<9x512xf32>
    %5 = tpu.matmul %3, %4, %cst {dimension_numbers = #tpu.dot_dimension_numbers<[1], [0], [0], [1], [0, 0, 1, 1], [], []>} : vector<9x150xbf16>, vector<150x512xbf16>, vector<9x512xf32> -> vector<9x512xf32>
    %c0_4 = arith.constant 0 : index
    %c0_5 = arith.constant 0 : index
    %6 = vector.load %arg3[%c0_4, %c0_5] : memref<9x512xf32, #tpu.memory_space<vmem>>, vector<9x512xf32>
    tpu.vector_store %arg3[%c0_4, %c0_5], %5 {strides = array<i32>} : memref<9x512xf32, #tpu.memory_space<vmem>>, vector<9x512xf32>,
    %c0_6 = arith.constant 0 : index
    %c0_7 = arith.constant 0 : index
    %7 = vector.load %arg4[%c0_6, %c0_7] : memref<9x1xf32, #tpu.memory_space<vmem>>, vector<9x1xf32>
    %cst_8 = arith.constant dense<0.000000e+00> : vector<9xf32>
    %8 = vector.multi_reduction <add>, %5, %cst_8 [1] : vector<9x512xf32> to vector<9xf32>
    %9 = vector.shape_cast %8 : vector<9xf32> to vector<9x1xf32>
    %10 = arith.addf %7, %9 : vector<9x1xf32>
    %c0_9 = arith.constant 0 : index
    %c0_10 = arith.constant 0 : index
    %11 = vector.load %arg4[%c0_9, %c0_10] : memref<9x1xf32, #tpu.memory_space<vmem>>, vector<9x1xf32>
    tpu.vector_store %arg4[%c0_9, %c0_10], %10 {strides = array<i32>} : memref<9x1xf32, #tpu.memory_space<vmem>>, vector<9x1xf32>,
    %c0_11 = arith.constant 0 : index
    %c0_12 = arith.constant 0 : index
    %12 = vector.load %arg5[%c0_11, %c0_12] : memref<9x1xf32, #tpu.memory_space<vmem>>, vector<9x1xf32>
    %13 = arith.mulf %5, %5 : vector<9x512xf32>
    %cst_13 = arith.constant dense<0.000000e+00> : vector<9xf32>
    %14 = vector.multi_reduction <add>, %13, %cst_13 [1] : vector<9x512xf32> to vector<9xf32>
    %15 = vector.shape_cast %14 : vector<9xf32> to vector<9x1xf32>
    %16 = arith.addf %12, %15 : vector<9x1xf32>
    %c0_14 = arith.constant 0 : index
    %c0_15 = arith.constant 0 : index
    %17 = vector.load %arg5[%c0_14, %c0_15] : memref<9x1xf32, #tpu.memory_space<vmem>>, vector<9x1xf32>
    tpu.vector_store %arg5[%c0_14, %c0_15], %16 {strides = array<i32>} : memref<9x1xf32, #tpu.memory_space<vmem>>, vector<9x1xf32>,
    return
  }
  func.func @transform_0(%arg0: i32) -> (i32, i32) {
    %c0_i32 = arith.constant 0 : i32
    %c0_i32_0 = arith.constant 0 : i32
    return %c0_i32, %arg0 : i32, i32
  }
  func.func @transform_1(%arg0: i32) -> (i32, i32) {
    %c0_i32 = arith.constant 0 : i32
    %c0_i32_0 = arith.constant 0 : i32
    %c0_i32_1 = arith.constant 0 : i32
    return %c0_i32, %c0_i32_0 : i32, i32
  }
  func.func @transform_2(%arg0: i32) -> (i32, i32) {
    %c0_i32 = arith.constant 0 : i32
    %c0_i32_0 = arith.constant 0 : i32
    return %c0_i32, %arg0 : i32, i32
  }
  func.func @transform_3(%arg0: i32) -> (i32, i32) {
    %c0_i32 = arith.constant 0 : i32
    %c0_i32_0 = arith.constant 0 : i32
    %c0_i32_1 = arith.constant 0 : i32
    return %c0_i32, %c0_i32_0 : i32, i32
  }
  func.func @transform_4(%arg0: i32) -> (i32, i32) {
    %c0_i32 = arith.constant 0 : i32
    %c0_i32_0 = arith.constant 0 : i32
    %c0_i32_1 = arith.constant 0 : i32
    return %c0_i32, %c0_i32_0 : i32, i32
  }
}

module attributes {stable_mosaic.version = 11 : i64} {
  func.func @kernel(%arg0: i32, %arg1: memref<9x512xf32, #tpu.memory_space<vmem>>, %arg2: memref<9x1xf32, #tpu.memory_space<vmem>>, %arg3: memref<9x1xf32, #tpu.memory_space<vmem>>, %arg4: memref<6x9xbf16, #tpu.memory_space<vmem>>, %arg5: memref<6x512xf32, #tpu.memory_space<vmem>>, %arg6: memref<6x1xf32, #tpu.memory_space<vmem>>, %arg7: memref<6x1xf32, #tpu.memory_space<vmem>>) attributes {dimension_semantics = [#tpu.dimension_semantics<arbitrary>], iteration_bounds = array<i64: 1>, scalar_prefetch = 0 : i64, scratch_operands = 0 : i64, tpu.core_type = #tpu.core_type<tc>, window_params = [{transform_indices = @transform_0, window_bounds = array<i64: 9, 512>}, {pipeline_mode = #tpu.pipeline_mode<synchronous>, transform_indices = @transform_1, window_bounds = array<i64: 9, 1>}, {pipeline_mode = #tpu.pipeline_mode<synchronous>, transform_indices = @transform_2, window_bounds = array<i64: 9, 1>}, {pipeline_mode = #tpu.pipeline_mode<synchronous>, transform_indices = @transform_3, window_bounds = array<i64: 6, 9>}, {transform_indices = @transform_4, window_bounds = array<i64: 6, 512>}, {pipeline_mode = #tpu.pipeline_mode<synchronous>, transform_indices = @transform_5, window_bounds = array<i64: 6, 1>}, {pipeline_mode = #tpu.pipeline_mode<synchronous>, transform_indices = @transform_6, window_bounds = array<i64: 6, 1>}]} {
    %c0_i32 = arith.constant 0 : i32
    %0 = arith.cmpi eq, %arg0, %c0_i32 : i32
    %1 = arith.extui %0 : i1 to i32
    %c0_i32_0 = arith.constant 0 : i32
    %2 = arith.cmpi ne, %1, %c0_i32_0 : i32
    scf.if %2 {
      %cst_23 = arith.constant 0.000000e+00 : f32
      %35 = vector.broadcast %cst_23 : f32 to vector<6x1xf32>
      %c0_24 = arith.constant 0 : index
      %c0_25 = arith.constant 0 : index
      %36 = vector.load %arg6[%c0_24, %c0_25] : memref<6x1xf32, #tpu.memory_space<vmem>>, vector<6x1xf32>
      tpu.vector_store %arg6[%c0_24, %c0_25], %35 {strides = array<i32>} : memref<6x1xf32, #tpu.memory_space<vmem>>, vector<6x1xf32>,
      %cst_26 = arith.constant 0.000000e+00 : f32
      %37 = vector.broadcast %cst_26 : f32 to vector<6x1xf32>
      %c0_27 = arith.constant 0 : index
      %c0_28 = arith.constant 0 : index
      %38 = vector.load %arg7[%c0_27, %c0_28] : memref<6x1xf32, #tpu.memory_space<vmem>>, vector<6x1xf32>
      tpu.vector_store %arg7[%c0_27, %c0_28], %37 {strides = array<i32>} : memref<6x1xf32, #tpu.memory_space<vmem>>, vector<6x1xf32>,
    } else {
    }
    %c0 = arith.constant 0 : index
    %c0_1 = arith.constant 0 : index
    %3 = vector.load %arg1[%c0, %c0_1] : memref<9x512xf32, #tpu.memory_space<vmem>>, vector<9x512xf32>
    %c0_2 = arith.constant 0 : index
    %c0_3 = arith.constant 0 : index
    %4 = vector.load %arg2[%c0_2, %c0_3] : memref<9x1xf32, #tpu.memory_space<vmem>>, vector<9x1xf32>
    %5 = vector.broadcast %4 : vector<9x1xf32> to vector<9x512xf32>
    %6 = arith.mulf %3, %5 : vector<9x512xf32>
    %c0_4 = arith.constant 0 : index
    %c0_5 = arith.constant 0 : index
    %7 = vector.load %arg3[%c0_4, %c0_5] : memref<9x1xf32, #tpu.memory_space<vmem>>, vector<9x1xf32>
    %8 = vector.broadcast %7 : vector<9x1xf32> to vector<9x512xf32>
    %9 = arith.addf %6, %8 : vector<9x512xf32>
    %cst = arith.constant 2.000000e+01 : f32
    %10 = vector.broadcast %cst : f32 to vector<9x512xf32>
    %11 = arith.minimumf %9, %10 : vector<9x512xf32>
    %12 = math.exp %11 : vector<9x512xf32>
    %cst_6 = arith.constant 2.000000e+00 : f32
    %13 = vector.broadcast %cst_6 : f32 to vector<9x512xf32>
    %14 = arith.addf %12, %13 : vector<9x512xf32>
    %15 = arith.mulf %12, %14 : vector<9x512xf32>
    %cst_7 = arith.constant 2.000000e+00 : f32
    %16 = vector.broadcast %cst_7 : f32 to vector<9x512xf32>
    %17 = arith.addf %15, %16 : vector<9x512xf32>
    %18 = arith.divf %15, %17 : vector<9x512xf32>
    %19 = arith.mulf %9, %18 : vector<9x512xf32>
    %c0_8 = arith.constant 0 : index
    %c0_9 = arith.constant 0 : index
    %20 = vector.load %arg4[%c0_8, %c0_9] : memref<6x9xbf16, #tpu.memory_space<vmem>>, vector<6x9xbf16>
    %21 = arith.truncf %19 : vector<9x512xf32> to vector<9x512xbf16>
    %cst_10 = arith.constant dense<0.000000e+00> : vector<6x512xf32>
    %22 = tpu.matmul %20, %21, %cst_10 {dimension_numbers = #tpu.dot_dimension_numbers<[1], [0], [0], [1], [0, 0, 1, 1], [], []>} : vector<6x9xbf16>, vector<9x512xbf16>, vector<6x512xf32> -> vector<6x512xf32>
    %c0_11 = arith.constant 0 : index
    %c0_12 = arith.constant 0 : index
    %23 = vector.load %arg5[%c0_11, %c0_12] : memref<6x512xf32, #tpu.memory_space<vmem>>, vector<6x512xf32>
    tpu.vector_store %arg5[%c0_11, %c0_12], %22 {strides = array<i32>} : memref<6x512xf32, #tpu.memory_space<vmem>>, vector<6x512xf32>,
    %c0_13 = arith.constant 0 : index
    %c0_14 = arith.constant 0 : index
    %24 = vector.load %arg6[%c0_13, %c0_14] : memref<6x1xf32, #tpu.memory_space<vmem>>, vector<6x1xf32>
    %cst_15 = arith.constant dense<0.000000e+00> : vector<6xf32>
    %25 = vector.multi_reduction <add>, %22, %cst_15 [1] : vector<6x512xf32> to vector<6xf32>
    %26 = vector.shape_cast %25 : vector<6xf32> to vector<6x1xf32>
    %27 = arith.addf %24, %26 : vector<6x1xf32>
    %c0_16 = arith.constant 0 : index
    %c0_17 = arith.constant 0 : index
    %28 = vector.load %arg6[%c0_16, %c0_17] : memref<6x1xf32, #tpu.memory_space<vmem>>, vector<6x1xf32>
    tpu.vector_store %arg6[%c0_16, %c0_17], %27 {strides = array<i32>} : memref<6x1xf32, #tpu.memory_space<vmem>>, vector<6x1xf32>,
    %c0_18 = arith.constant 0 : index
    %c0_19 = arith.constant 0 : index
    %29 = vector.load %arg7[%c0_18, %c0_19] : memref<6x1xf32, #tpu.memory_space<vmem>>, vector<6x1xf32>
    %30 = arith.mulf %22, %22 : vector<6x512xf32>
    %cst_20 = arith.constant dense<0.000000e+00> : vector<6xf32>
    %31 = vector.multi_reduction <add>, %30, %cst_20 [1] : vector<6x512xf32> to vector<6xf32>
    %32 = vector.shape_cast %31 : vector<6xf32> to vector<6x1xf32>
    %33 = arith.addf %29, %32 : vector<6x1xf32>
    %c0_21 = arith.constant 0 : index
    %c0_22 = arith.constant 0 : index
    %34 = vector.load %arg7[%c0_21, %c0_22] : memref<6x1xf32, #tpu.memory_space<vmem>>, vector<6x1xf32>
    tpu.vector_store %arg7[%c0_21, %c0_22], %33 {strides = array<i32>} : memref<6x1xf32, #tpu.memory_space<vmem>>, vector<6x1xf32>,
    return
  }
  func.func @transform_0(%arg0: i32) -> (i32, i32) {
    %c0_i32 = arith.constant 0 : i32
    %c0_i32_0 = arith.constant 0 : i32
    return %c0_i32, %arg0 : i32, i32
  }
  func.func @transform_1(%arg0: i32) -> (i32, i32) {
    %c0_i32 = arith.constant 0 : i32
    %c0_i32_0 = arith.constant 0 : i32
    %c0_i32_1 = arith.constant 0 : i32
    return %c0_i32, %c0_i32_0 : i32, i32
  }
  func.func @transform_2(%arg0: i32) -> (i32, i32) {
    %c0_i32 = arith.constant 0 : i32
    %c0_i32_0 = arith.constant 0 : i32
    %c0_i32_1 = arith.constant 0 : i32
    return %c0_i32, %c0_i32_0 : i32, i32
  }
  func.func @transform_3(%arg0: i32) -> (i32, i32) {
    %c0_i32 = arith.constant 0 : i32
    %c0_i32_0 = arith.constant 0 : i32
    %c0_i32_1 = arith.constant 0 : i32
    return %c0_i32, %c0_i32_0 : i32, i32
  }
  func.func @transform_4(%arg0: i32) -> (i32, i32) {
    %c0_i32 = arith.constant 0 : i32
    %c0_i32_0 = arith.constant 0 : i32
    return %c0_i32, %arg0 : i32, i32
  }
  func.func @transform_5(%arg0: i32) -> (i32, i32) {
    %c0_i32 = arith.constant 0 : i32
    %c0_i32_0 = arith.constant 0 : i32
    %c0_i32_1 = arith.constant 0 : i32
    return %c0_i32, %c0_i32_0 : i32, i32
  }
  func.func @transform_6(%arg0: i32) -> (i32, i32) {
    %c0_i32 = arith.constant 0 : i32
    %c0_i32_0 = arith.constant 0 : i32
    %c0_i32_1 = arith.constant 0 : i32
    return %c0_i32, %c0_i32_0 : i32, i32
  }
}

module attributes {stable_mosaic.version = 11 : i64} {
  func.func @_bn_mish_kernel(%arg0: i32, %arg1: memref<6x512xf32, #tpu.memory_space<vmem>>, %arg2: memref<6x1xf32, #tpu.memory_space<vmem>>, %arg3: memref<6x1xf32, #tpu.memory_space<vmem>>, %arg4: memref<6x512xf32, #tpu.memory_space<vmem>>) attributes {dimension_semantics = [#tpu.dimension_semantics<parallel>], iteration_bounds = array<i64: 1>, scalar_prefetch = 0 : i64, scratch_operands = 0 : i64, tpu.core_type = #tpu.core_type<tc>, window_params = [{transform_indices = @transform_0, window_bounds = array<i64: 6, 512>}, {pipeline_mode = #tpu.pipeline_mode<synchronous>, transform_indices = @transform_1, window_bounds = array<i64: 6, 1>}, {pipeline_mode = #tpu.pipeline_mode<synchronous>, transform_indices = @transform_2, window_bounds = array<i64: 6, 1>}, {transform_indices = @transform_3, window_bounds = array<i64: 6, 512>}]} {
    %c0 = arith.constant 0 : index
    %c0_0 = arith.constant 0 : index
    %0 = vector.load %arg1[%c0, %c0_0] : memref<6x512xf32, #tpu.memory_space<vmem>>, vector<6x512xf32>
    %c0_1 = arith.constant 0 : index
    %c0_2 = arith.constant 0 : index
    %1 = vector.load %arg2[%c0_1, %c0_2] : memref<6x1xf32, #tpu.memory_space<vmem>>, vector<6x1xf32>
    %2 = vector.broadcast %1 : vector<6x1xf32> to vector<6x512xf32>
    %3 = arith.mulf %0, %2 : vector<6x512xf32>
    %c0_3 = arith.constant 0 : index
    %c0_4 = arith.constant 0 : index
    %4 = vector.load %arg3[%c0_3, %c0_4] : memref<6x1xf32, #tpu.memory_space<vmem>>, vector<6x1xf32>
    %5 = vector.broadcast %4 : vector<6x1xf32> to vector<6x512xf32>
    %6 = arith.addf %3, %5 : vector<6x512xf32>
    %cst = arith.constant 2.000000e+01 : f32
    %7 = vector.broadcast %cst : f32 to vector<6x512xf32>
    %8 = arith.minimumf %6, %7 : vector<6x512xf32>
    %9 = math.exp %8 : vector<6x512xf32>
    %cst_5 = arith.constant 2.000000e+00 : f32
    %10 = vector.broadcast %cst_5 : f32 to vector<6x512xf32>
    %11 = arith.addf %9, %10 : vector<6x512xf32>
    %12 = arith.mulf %9, %11 : vector<6x512xf32>
    %13 = arith.mulf %6, %12 : vector<6x512xf32>
    %cst_6 = arith.constant 2.000000e+00 : f32
    %14 = vector.broadcast %cst_6 : f32 to vector<6x512xf32>
    %15 = arith.addf %12, %14 : vector<6x512xf32>
    %16 = tpu.reciprocal %15 {approx = true} : vector<6x512xf32> -> vector<6x512xf32>
    %17 = arith.mulf %13, %16 : vector<6x512xf32>
    %c0_7 = arith.constant 0 : index
    %c0_8 = arith.constant 0 : index
    %18 = vector.load %arg4[%c0_7, %c0_8] : memref<6x512xf32, #tpu.memory_space<vmem>>, vector<6x512xf32>
    tpu.vector_store %arg4[%c0_7, %c0_8], %17 {strides = array<i32>} : memref<6x512xf32, #tpu.memory_space<vmem>>, vector<6x512xf32>,
    return
  }
  func.func @transform_0(%arg0: i32) -> (i32, i32) {
    %c0_i32 = arith.constant 0 : i32
    %c0_i32_0 = arith.constant 0 : i32
    return %c0_i32, %arg0 : i32, i32
  }
  func.func @transform_1(%arg0: i32) -> (i32, i32) {
    %c0_i32 = arith.constant 0 : i32
    %c0_i32_0 = arith.constant 0 : i32
    %c0_i32_1 = arith.constant 0 : i32
    return %c0_i32, %c0_i32_0 : i32, i32
  }
  func.func @transform_2(%arg0: i32) -> (i32, i32) {
    %c0_i32 = arith.constant 0 : i32
    %c0_i32_0 = arith.constant 0 : i32
    %c0_i32_1 = arith.constant 0 : i32
    return %c0_i32, %c0_i32_0 : i32, i32
  }
  func.func @transform_3(%arg0: i32) -> (i32, i32) {
    %c0_i32 = arith.constant 0 : i32
    %c0_i32_0 = arith.constant 0 : i32
    return %c0_i32, %arg0 : i32, i32
  }
}

</mosaic_0001>

<bundles_post_ra>
// kernel: _lambda_.4
= control target key start
LH: loop header
LB: loop body
LE: loop exit
PB: predicated region body
PF: predicated region fallthrough
CT: control target
= control target key end

     0   :  { %v340_v0 = vmov 0   ;;  %vm157_vm0 = vcmask 1043456   ;;  %vm158_vm1 = vcmask 1044480   ;;  %vm153_vm2 = vcmask 72704   ;;  %s491_s2 = inlined_call_operand.vmem [shape: f32[9,1], index: 2, kind: input, shape index: {}]   ;;  %s492_s1 = inlined_call_operand.vmem [shape: f32[9,1], index: 1, kind: input, shape index: {}]   ;;  %s493_s0 = inlined_call_operand.vmem [shape: f32[9,512], index: 0, kind: input, shape index: {}]   ;;  %s494_s3 = inlined_call_operand.vmem [shape: bf16[6,9], index: 3, kind: input, shape index: {}]   ;;  %s495_s5 = inlined_call_operand.vmem [shape: f32[6,1], index: 5, kind: output, shape index: {1}]   ;;  %s496_s4 = inlined_call_operand.vmem [shape: f32[6,512], index: 4, kind: output, shape index: {0}]   ;;  %s497_s6 = inlined_call_operand.vmem [shape: f32[6,1], index: 6, kind: output, shape index: {2}]  }
   0x1   :  { %307 = vset.pattern.permute.xlu1 %v340_v0  ;;  %306 = vset.pattern.permute.xlu0 %v340_v0  ;;  %v56_v1 = vld [vmem:[%s491_s2] sm:$0xff]  ;;  %v57_v3 = vld [vmem:[%s491_s2 + $0x8] sm:$0x1]  ;;  %v30_v7 = vld [vmem:[%s493_s0 + $0x10] sm:$0xff]  ;;  %vm25_vm3 = vcmask 5120   ;;  %vm260_vm4 = vcmask 1045504  }
   0x2   :  { %v36_v2 = vld [vmem:[%s492_s1] sm:$0xff]  ;;  %60 = vperm.xlu1 %307, %v56_v1   ;;  %v37_v4 = vld [vmem:[%s492_s1 + $0x8] sm:$0x1]  ;;  %205 = vmatprep.mubr.bf16.mxu0 %v340_v0  ;;  %v31_v8 = vld [vmem:[%s493_s0 + $0x18] sm:$0xff] }
   0x3   :  { %40 = vperm.xlu0 %306, %v36_v2   ;;  %246 = vmatprep.mubr.bf16.mxu1 %v340_v0  ;;  %v28_v5 = vld [vmem:[%s493_s0] sm:$0xff]  ;;  %v29_v6 = vld [vmem:[%s493_s0 + $0x8] sm:$0xff]  ;;  %v34_v17 = vld [vmem:[%s493_s0 + $0x30] sm:$0x1] }
   0x4   :  { %v32_v15 = vld [vmem:[%s493_s0 + $0x20] sm:$0x1]  ;;  %v33_v16 = vld [vmem:[%s493_s0 + $0x28] sm:$0x1]  ;;  %v35_v18 = vld [vmem:[%s493_s0 + $0x38] sm:$0x1] }
   0x6   :  { %65 = vperm.xlu1 %307, %v57_v3  }
   0x7   :  { %45 = vperm.xlu0 %306, %v37_v4  }
  0x7d   :  { %v61_v9 = vpop.permute.xlu1 %60 }
  0x7e   :  { %v41_v10 = vpop.permute.xlu0 %40 }
  0x7f   :  { %v48_v11 = vmul.f32 %v41_v10, %v28_v5  ;;  %v49_v12 = vmul.f32 %v41_v10, %v29_v6  ;;  %v50_v13 = vmul.f32 %v41_v10, %v30_v7  ;;  %v51_v14 = vmul.f32 %v41_v10, %v31_v8 }
  0x81   :  { %v414_v19 = vadd.f32 %v61_v9, %v49_v12  ;;  %v416_v20 = vadd.f32 %v61_v9, %v51_v14  ;;  %v418_v21 = vadd.f32 %v61_v9, %v48_v11  ;;  %v420_v22 = vadd.f32 %v61_v9, %v50_v13  ;;  %v66_v28 = vpop.permute.xlu1 %65 }
  0x82   :  { %v46_v23 = vpop.permute.xlu0 %45 }
  0x83   :  { %v52_v24 = vmul.f32 %v46_v23, %v32_v15  ;;  %v53_v25 = vmul.f32 %v46_v23, %v33_v16  ;;  %v54_v26 = vmul.f32 %v46_v23, %v34_v17  ;;  %v55_v27 = vmul.f32 %v46_v23, %v35_v18 }
  0x84   :  { %v77_v29 = vmin.f32 %v414_v19, 20.0  ;;  %v79_v30 = vmin.f32 %v416_v20, 20.0  ;;  %v76_v31 = vmin.f32 %v418_v21, 20.0  ;;  %v78_v32 = vmin.f32 %v420_v22, 20.0 }
  0x85   :  { %v426_v33 = vadd.f32 %v66_v28, %v53_v25  ;;  %v428_v34 = vadd.f32 %v66_v28, %v55_v27  ;;  %v430_v35 = vadd.f32 %v66_v28, %v52_v24  ;;  %v432_v36 = vadd.f32 %v66_v28, %v54_v26 }
  0x86   :  { %v86_v37 = vmul.f32 1.442695, %v77_v29  ;;  %v90_v38 = vmul.f32 1.442695, %v79_v30  ;;  %v84_v39 = vmul.f32 1.442695, %v76_v31 }
  0x87   :  { %v81_v40 = vmin.f32 %v426_v33, 20.0  ;;  %v83_v41 = vmin.f32 %v428_v34, 20.0  ;;  %v80_v42 = vmin.f32 %v430_v35, 20.0  ;;  %v82_v43 = vmin.f32 %v432_v36, 20.0 }
  0x88   :  { %308 = vpow2.f32 %v86_v37  ;;  %v88_v47 = vmul.f32 1.442695, %v78_v32  ;;  %v341_v29 = vmov 65535  }
  0x89   :  { %v94_v44 = vmul.f32 1.442695, %v81_v40  ;;  %310 = vpow2.f32 %v90_v38  ;;  %v98_v45 = vmul.f32 1.442695, %v83_v41  ;;  %v92_v46 = vmul.f32 1.442695, %v80_v42 }
  0x8a   :  { %312 = vpow2.f32 %v84_v39  ;;  %v96_v48 = vmul.f32 1.442695, %v82_v43  ;;  %v159_v30 = vsel %vm157_vm0, 4294967295, %v341_v29 }
  0x8b   :  { %314 = vpow2.f32 %v94_v44  ;;  %v160_v43 = vsel %vm158_vm1, %v159_v30, 0 }
  0x8c   :  { %316 = vpow2.f32 %v98_v45 }
  0x8d   :  { %318 = vpow2.f32 %v92_v46 }
  0x8e   :  { %320 = vpow2.f32 %v88_v47 }
  0x8f   :  { %322 = vpow2.f32 %v96_v48 }
  0x95   :  { %v309_v49 = vpop.eup %308 }
  0x96   :  { %v311_v50 = vpop.eup %310  ;;  %v101_v51 = vadd.f32 2.0, %v309_v49 }
  0x97   :  { %v313_v52 = vpop.eup %312  ;;  %v103_v53 = vadd.f32 2.0, %v311_v50 }
  0x98   :  { %v315_v54 = vpop.eup %314  ;;  %v109_v55 = vmul.f32 %v309_v49, %v101_v51  ;;  %v100_v56 = vadd.f32 2.0, %v313_v52 }
  0x99   :  { %v317_v57 = vpop.eup %316  ;;  %v105_v58 = vadd.f32 2.0, %v315_v54  ;;  %v111_v59 = vmul.f32 %v311_v50, %v103_v53 }
  0x9a   :  { %v319_v60 = vpop.eup %318  ;;  %v117_v61 = vadd.f32 2.0, %v109_v55  ;;  %v107_v62 = vadd.f32 2.0, %v317_v57  ;;  %v108_v63 = vmul.f32 %v313_v52, %v100_v56 }
  0x9b   :  { %v321_v0 = vpop.eup %320  ;;  %v113_v1 = vmul.f32 %v315_v54, %v105_v58  ;;  %v119_v2 = vadd.f32 2.0, %v111_v59  ;;  %v104_v3 = vadd.f32 2.0, %v319_v60 }
  0x9c   :  { %v323_v4 = vpop.eup %322  ;;  %324 = vrcp.f32 %v117_v61  ;;  %v115_v5 = vmul.f32 %v317_v57, %v107_v62  ;;  %v116_v6 = vadd.f32 2.0, %v108_v63  ;;  %v102_v7 = vadd.f32 2.0, %v321_v0 }
  0x9d   :  { %v121_v8 = vadd.f32 2.0, %v113_v1  ;;  %326 = vrcp.f32 %v119_v2  ;;  %v112_v9 = vmul.f32 %v319_v60, %v104_v3  ;;  %v106_v10 = vadd.f32 2.0, %v323_v4 }
  0x9e   :  { %v123_v11 = vadd.f32 2.0, %v115_v5  ;;  %328 = vrcp.f32 %v116_v6  ;;  %v110_v12 = vmul.f32 %v321_v0, %v102_v7 }
  0x9f   :  { %330 = vrcp.f32 %v121_v8  ;;  %v120_v13 = vadd.f32 2.0, %v112_v9  ;;  %v114_v14 = vmul.f32 %v323_v4, %v106_v10 }
  0xa0   :  { %332 = vrcp.f32 %v123_v11  ;;  %v118_v15 = vadd.f32 2.0, %v110_v12 }
  0xa1   :  { %334 = vrcp.f32 %v120_v13  ;;  %v122_v16 = vadd.f32 2.0, %v114_v14 }
  0xa2   :  { %336 = vrcp.f32 %v118_v15 }
  0xa3   :  { %338 = vrcp.f32 %v122_v16 }
  0xa9   :  { %v325_v17 = vpop.eup %324 }
  0xaa   :  { %v327_v18 = vpop.eup %326  ;;  %v127_v24 = vmul.f32 %v325_v17, %v109_v55 }
  0xab   :  { %v329_v23 = vpop.eup %328  ;;  %v131_v26 = vmul.f32 %v327_v18, %v111_v59 }
  0xac   :  { %v331_v25 = vpop.eup %330  ;;  %v125_v31 = vmul.f32 %v329_v23, %v108_v63  ;;  %v141_v39 = vmul.f32 %v127_v24, %v414_v19 }
  0xad   :  { %v333_v27 = vpop.eup %332  ;;  %v135_v28 = vmul.f32 %v331_v25, %v113_v1  ;;  %v143_v44 = vmul.f32 %v131_v26, %v416_v20 }
  0xae   :  { %v335_v32 = vpop.eup %334  ;;  %v139_v37 = vmul.f32 %v333_v27, %v115_v5  ;;  %v140_v48 = vmul.f32 %v125_v31, %v418_v21  ;;  %v148_v21 = vld [vmem:[%s494_s3] sm:$0x7] }
  0xaf   :  { %v337_v38 = vpop.eup %336  ;;  %v145_v40 = vmul.f32 %v135_v28, %v426_v33  ;;  %v133_v41 = vmul.f32 %v335_v32, %v112_v9 }
  0xb0   :  { %v339_v42 = vpop.eup %338  ;;  %v147_v45 = vmul.f32 %v139_v37, %v428_v34  ;;  %v129_v46 = vmul.f32 %v337_v38, %v110_v12 }
  0xb1   :  { %v150_v47 = vpack.c.bf16 %v145_v40, %v141_v39  ;;  %v144_v49 = vmul.f32 %v133_v41, %v430_v35  ;;  %v137_v50 = vmul.f32 %v339_v42, %v114_v14  ;;  %v342_v35 = vmov 0.0  }
  0xb2   :  { %v152_v51 = vpack.c.bf16 %v147_v45, %v143_v44  ;;  %v142_v19 = vmul.f32 %v129_v46, %v420_v22  ;;  %26 = vst.msk [vmem:[%s495_s5] sm:$0x3f] %vm25_vm3, %v342_v35  ;;  %27 = vst.msk [vmem:[%s497_s6] sm:$0x3f] %vm25_vm3, %v342_v35 }
  0xb3   :  { %v165_v52 = vand.u32 %v160_v43, %v150_v47  ;;  %v149_v53 = vpack.c.bf16 %v144_v49, %v140_v48  ;;  %v146_v33 = vmul.f32 %v137_v50, %v432_v36 }
  0xb4   :  { %v171_v54 = vand.u32 %v160_v43, %v152_v51 }
  0xb5   :  { %187 = vmatprep.subr.bf16.mxu0 %v165_v52  ;;  %v162_v55 = vand.u32 %v160_v43, %v149_v53  ;;  %v151_v20 = vpack.c.bf16 %v146_v33, %v142_v19 }
  0xb6   :  { %228 = vmatprep.subr.bf16.mxu1 %v171_v54 }
  0xb7   :  { %188 = vmatpush1.bf16.msra.mxu0 %v162_v55  ;;  %v168_v34 = vand.u32 %v160_v43, %v151_v20 }
  0xb9   :  { %229 = vmatpush1.bf16.msra.mxu1 %v168_v34  ;;  %v259_v16 = vld [vmem:[%s495_s5] sm:$0x3f] }
  0xba   :  { %301 = vmatmul.mubr.msk.bf16.vlgmr.msra.gmra.mxu0 %vm153_vm2, %v148_v21  ;;  %v273_v23 = vld [vmem:[%s497_s6] sm:$0x3f] }
  0xbc   :  { %302 = vmatmul.mubr.msk.bf16.vlgmr.msra.gmra.mxu1 %vm153_vm2, %v148_v21 }
 0x17a   :  { %v207_v22 = vpop.f32.mrf.mxu0 }
 0x17b   :  { %255 = vst [vmem:[%s496_s4] sm:$0x3f] %v207_v22  ;;  %v274_v36 = vmul.f32 %v207_v22, %v207_v22  ;;  %v261_v58 = vsel %vm260_vm4, %v207_v22, 0.0 }
 0x17c   :  { %v248_v56 = vpop.f32.mrf.mxu1  ;;  %v209_v57 = vpop.f32.mrf.mxu0 }
 0x17d   :  { %257 = vst [vmem:[%s496_s4 + $0x10] sm:$0x3f] %v248_v56  ;;  %v264_v59 = vsel %vm260_vm4, %v248_v56, 0.0  ;;  %v276_v60 = vmul.f32 %v248_v56, %v248_v56  ;;  %256 = vst [vmem:[%s496_s4 + $0x8] sm:$0x3f] %v209_v57  ;;  %v262_v61 = vsel %vm260_vm4, %v209_v57, 0.0  ;;  %v275_v63 = vmul.f32 %v209_v57, %v209_v57 }
 0x17e   :  { %v263_v62 = vadd.f32 %v262_v61, %v261_v58  ;;  %v250_v0 = vpop.f32.mrf.mxu1  ;;  %v211_v1 = vpop.f32.mrf.mxu0  ;;  %v278_v2 = vsel %vm260_vm4, %v274_v36, 0.0 }
 0x17f   :  { %258 = vst [vmem:[%s496_s4 + $0x18] sm:$0x3f] %v250_v0  ;;  %v279_v3 = vsel %vm260_vm4, %v275_v63, 0.0  ;;  %v277_v4 = vmul.f32 %v250_v0, %v250_v0  ;;  %v281_v8 = vsel %vm260_vm4, %v276_v60, 0.0  ;;  %v266_v9 = vsel %vm260_vm4, %v250_v0, 0.0 }
 0x180   :  { %v252_v5 = vpop.f32.mrf.mxu1  ;;  %v212_v6 = vpop.f32.mrf.mxu0  ;;  %v265_v7 = vadd.f32 %v264_v59, %v263_v62  ;;  %v280_v10 = vadd.f32 %v279_v3, %v278_v2 }
 0x181   :  { %v283_v14 = vsel %vm260_vm4, %v277_v4, 0.0 }
 0x182   :  { %v253_v11 = vpop.f32.mrf.mxu1  ;;  %v267_v12 = vadd.f32 %v266_v9, %v265_v7  ;;  %v282_v13 = vadd.f32 %v281_v8, %v280_v10 }
 0x184   :  { %268 = vadd.xlane.f32.xlu0 %v267_v12  ;;  %v284_v15 = vadd.f32 %v283_v14, %v282_v13 }
 0x186   :  { %285 = vadd.xlane.f32.xlu1 %v284_v15 }
 0x20d   :  { %v269_v17 = vpop.xlane.xlu0 %268 }
 0x20e   :  { %v270_v18 = vadd.f32 %v269_v17, %v259_v16 }
 0x20f   :  { %v286_v24 = vpop.xlane.xlu1 %285 }
 0x210   :  { %272 = vst.msk [vmem:[%s495_s5] sm:$0x3f] %vm25_vm3, %v270_v18  ;;  %v287_v25 = vadd.f32 %v286_v24, %v273_v23 }
 0x212   :  { %288 = vst.msk [vmem:[%s497_s6] sm:$0x3f] %vm25_vm3, %v287_v25 }

// kernel: _lambda_.3
= control target key start
LH: loop header
LB: loop body
LE: loop exit
PB: predicated region body
PF: predicated region fallthrough
CT: control target
= control target key end

     0   :  { %vm264_vm0 = vcmask 179200   ;;  %vm268_vm1 = vcmask 1042432   ;;  %vm19_vm2 = vcmask 7168   ;;  %v546_v46 = vmov 0.0   ;;  %s768_s0 = inlined_call_operand.vmem [shape: bf16[150,512], index: 0, kind: input, shape index: {}]   ;;  %s769_s1 = inlined_call_operand.vmem [shape: bf16[9,150], index: 1, kind: input, shape index: {}]   ;;  %s770_s3 = inlined_call_operand.vmem [shape: f32[9,1], index: 3, kind: output, shape index: {1}]   ;;  %s771_s2 = inlined_call_operand.vmem [shape: f32[9,512], index: 2, kind: output, shape index: {0}]   ;;  %s772_s4 = inlined_call_operand.vmem [shape: f32[9,1], index: 4, kind: output, shape index: {2}]  }
   0x1   :  { %v485_v0 = vld [vmem:[%s768_s0 + $0xe4] ss:$16 sps:$4 sm:$0xff]   ;;  %v487_v1 = vld [vmem:[%s768_s0 + $0xec] ss:$16 sps:$4 sm:$0xff]   ;;  %v489_v2 = vld [vmem:[%s768_s0 + $0xe0] ss:$16 sps:$4 sm:$0xff]  }
   0x2   :  { %281 = vmatprep.subr.bf16.mxu0 %v485_v0  ;;  %v490_v3 = vld [vmem:[%s768_s0 + $0xe8] ss:$16 sps:$4 sm:$0xff]   ;;  %324 = vmatprep.subr.bf16.mxu1 %v487_v1  ;;  %v491_v4 = vld [vmem:[%s768_s0 + $0xc4] ss:$16 sps:$4 sm:$0xff]   ;;  %v493_v5 = vld [vmem:[%s768_s0 + $0xcc] ss:$16 sps:$4 sm:$0xff]  }
   0x3   :  { %282 = vmatpush1.bf16.msra.mxu0 %v489_v2  ;;  %325 = vmatpush1.bf16.msra.mxu1 %v490_v3  ;;  %v495_v6 = vld [vmem:[%s768_s0 + $0xc0] ss:$16 sps:$4 sm:$0xff]   ;;  %v496_v7 = vld [vmem:[%s768_s0 + $0xc8] ss:$16 sps:$4 sm:$0xff]   ;;  %v497_v8 = vld [vmem:[%s768_s0 + $0xa4] ss:$16 sps:$4 sm:$0xff]  }
   0x4   :  { %283 = vmatprep.subr.bf16.mxu0 %v491_v4  ;;  %326 = vmatprep.subr.bf16.mxu1 %v493_v5  ;;  %v499_v9 = vld [vmem:[%s768_s0 + $0xac] ss:$16 sps:$4 sm:$0xff]   ;;  %v501_v10 = vld [vmem:[%s768_s0 + $0xa0] ss:$16 sps:$4 sm:$0xff]   ;;  %v502_v11 = vld [vmem:[%s768_s0 + $0xa8] ss:$16 sps:$4 sm:$0xff]  }
   0x5   :  { %v503_v12 = vld [vmem:[%s768_s0 + $0x84] ss:$16 sps:$4 sm:$0xff]   ;;  %v505_v13 = vld [vmem:[%s768_s0 + $0x8c] ss:$16 sps:$4 sm:$0xff]   ;;  %v507_v14 = vld [vmem:[%s768_s0 + $0x80] ss:$16 sps:$4 sm:$0xff]  }
   0x6   :  { %v508_v15 = vld [vmem:[%s768_s0 + $0x88] ss:$16 sps:$4 sm:$0xff]   ;;  %v509_v16 = vld [vmem:[%s768_s0 + $0x64] ss:$16 sps:$4 sm:$0xff]   ;;  %v511_v17 = vld [vmem:[%s768_s0 + $0x6c] ss:$16 sps:$4 sm:$0xff]  }
   0x7   :  { %284 = vmatpush1.bf16.msra.mxu0 %v495_v6  ;;  %327 = vmatpush1.bf16.msra.mxu1 %v496_v7  ;;  %v513_v18 = vld [vmem:[%s768_s0 + $0x60] ss:$16 sps:$4 sm:$0xff]   ;;  %v514_v19 = vld [vmem:[%s768_s0 + $0x68] ss:$16 sps:$4 sm:$0xff]   ;;  %v515_v20 = vld [vmem:[%s768_s0 + $0x44] ss:$16 sps:$4 sm:$0xff]  }
   0x8   :  { %285 = vmatprep.subr.bf16.mxu0 %v497_v8  ;;  %328 = vmatprep.subr.bf16.mxu1 %v499_v9  ;;  %v517_v21 = vld [vmem:[%s768_s0 + $0x4c] ss:$16 sps:$4 sm:$0xff]   ;;  %v519_v22 = vld [vmem:[%s768_s0 + $0x40] ss:$16 sps:$4 sm:$0xff]   ;;  %v520_v23 = vld [vmem:[%s768_s0 + $0x48] ss:$16 sps:$4 sm:$0xff]  }
   0x9   :  { %v521_v24 = vld [vmem:[%s768_s0 + $0x24] ss:$16 sps:$4 sm:$0xff]   ;;  %v523_v25 = vld [vmem:[%s768_s0 + $0x2c] ss:$16 sps:$4 sm:$0xff]   ;;  %v525_v26 = vld [vmem:[%s768_s0 + $0x20] ss:$16 sps:$4 sm:$0xff]  }
   0xa   :  { %v526_v27 = vld [vmem:[%s768_s0 + $0x28] ss:$16 sps:$4 sm:$0xff]   ;;  %v527_v28 = vld [vmem:[%s768_s0 + $0x4] ss:$16 sps:$4 sm:$0xff]   ;;  %v529_v29 = vld [vmem:[%s768_s0 + $0xc] ss:$16 sps:$4 sm:$0xff]  }
   0xb   :  { %286 = vmatpush1.bf16.msra.mxu0 %v501_v10  ;;  %329 = vmatpush1.bf16.msra.mxu1 %v502_v11  ;;  %v63_v30 = vld [vmem:[%s768_s0 + $0x120] sm:$0x77]  ;;  %v64_v31 = vld [vmem:[%s768_s0 + $0x128] sm:$0x77]  ;;  %20 = vst.msk [vmem:[%s770_s3] sm:$0xff] %vm19_vm2, %v546_v46  ;;  %vm382_vm3 = vcmask 1040384  }
   0xc   :  { %287 = vmatprep.subr.bf16.mxu0 %v503_v12  ;;  %330 = vmatprep.subr.bf16.mxu1 %v505_v13  ;;  %v545_v32 = vld [vmem:[%s769_s1 + $0x4] ss:$8 sps:$4 sm:$0x1f]   ;;  %v531_v33 = vld [vmem:[%s768_s0] ss:$16 sps:$4 sm:$0xff]   ;;  %v477_v35 = vcombine.high %v63_v30, %v63_v30  ;;  %v479_v36 = vcombine.high %v64_v31, %v64_v31  ;;  %v476_v37 = vcombine.low %v63_v30, %v63_v30  ;;  %vm21_vm4 = vcmask 0  }
   0xd   :  { %v532_v34 = vld [vmem:[%s768_s0 + $0x8] ss:$16 sps:$4 sm:$0xff]   ;;  %v478_v38 = vcombine.low %v64_v31, %v64_v31  ;;  %481 = vmatprep.mubr.msk.bf16.mxu0 %vm264_vm0, %v545_v32  ;;  %483 = vmatprep.mubr.msk.bf16.mxu1 %vm264_vm0, %v545_v32  ;;  %v537_v41 = vld [vmem:[%s768_s0 + $0x104] ss:$16 sps:$4 sm:$0xff]   ;;  %v539_v42 = vld [vmem:[%s768_s0 + $0x10c] ss:$16 sps:$4 sm:$0xff]  }
   0xe   :  { %v270_v39 = vsel %vm268_vm1, %v476_v37, 0  ;;  %v541_v43 = vld [vmem:[%s768_s0 + $0x100] ss:$16 sps:$4 sm:$0xff]   ;;  %v542_v44 = vld [vmem:[%s768_s0 + $0x108] ss:$16 sps:$4 sm:$0xff]   ;;  %23 = vst.msk [vmem:[%s772_s4] sm:$0xff] %vm19_vm2, %v546_v46 }
   0xf   :  { %288 = vmatpush1.bf16.msra.mxu0 %v507_v14  ;;  %331 = vmatpush1.bf16.msra.mxu1 %v508_v15  ;;  %v276_v40 = vsel %vm268_vm1, %v478_v38, 0  ;;  %v543_v45 = vld [vmem:[%s769_s1] ss:$8 sps:$4 sm:$0x1f]   ;;  %22 = vst.msk [vmem:[%s770_s3 + $0x8] sm:$0x1] %vm21_vm4, %v546_v46 }
  0x10   :  { %289 = vmatprep.subr.bf16.mxu0 %v509_v16  ;;  %332 = vmatprep.subr.bf16.mxu1 %v511_v17  ;;  %24 = vst.msk [vmem:[%s772_s4 + $0x8] sm:$0x1] %vm21_vm4, %v546_v46 }
  0x13   :  { %290 = vmatpush1.bf16.msra.mxu0 %v513_v18  ;;  %333 = vmatpush1.bf16.msra.mxu1 %v514_v19  ;;  %v375_v19 = vld [vmem:[%s770_s3] sm:$0xff] }
  0x14   :  { %291 = vmatprep.subr.bf16.mxu0 %v515_v20  ;;  %334 = vmatprep.subr.bf16.mxu1 %v517_v21 }
  0x15   :  { %v398_v21 = vld [vmem:[%s772_s4] sm:$0xff] }
  0x17   :  { %292 = vmatpush1.bf16.msra.mxu0 %v519_v22  ;;  %335 = vmatpush1.bf16.msra.mxu1 %v520_v23 }
  0x18   :  { %293 = vmatprep.subr.bf16.mxu0 %v521_v24  ;;  %336 = vmatprep.subr.bf16.mxu1 %v523_v25  ;;  %v376_v24 = vld [vmem:[%s770_s3 + $0x8] sm:$0x1] }
  0x1b   :  { %294 = vmatpush1.bf16.msra.mxu0 %v525_v26  ;;  %337 = vmatpush1.bf16.msra.mxu1 %v526_v27  ;;  %v399_v27 = vld [vmem:[%s772_s4 + $0x8] sm:$0x1] }
  0x1c   :  { %295 = vmatprep.subr.bf16.mxu0 %v527_v28  ;;  %338 = vmatprep.subr.bf16.mxu1 %v529_v29 }
  0x1f   :  { %296 = vmatpush1.bf16.msra.mxu0 %v531_v33  ;;  %339 = vmatpush1.bf16.msra.mxu1 %v532_v34 }
  0x20   :  { %480 = vmatprep.subr.msk.bf16.mxu0 %vm268_vm1, %v477_v35  ;;  %482 = vmatprep.subr.msk.bf16.mxu1 %vm268_vm1, %v479_v36 }
  0x23   :  { %310 = vmatpush2.bf16.msra.mxu0 %v270_v39  ;;  %353 = vmatpush2.bf16.msra.mxu1 %v276_v40 }
  0x24   :  { %311 = vmatprep.subr.bf16.mxu0 %v537_v41  ;;  %354 = vmatprep.subr.bf16.mxu1 %v539_v42 }
  0x27   :  { %312 = vmatpush2.bf16.msra.mxu0 %v541_v43  ;;  %355 = vmatpush2.bf16.msra.mxu1 %v542_v44 }
  0x2a   :  { %314 = vmatmul.mubr.bf16.vlgmr.msra.gmra.mxu0 %v543_v45  ;;  %357 = vmatmul.mubr.bf16.vlgmr.msra.gmra.mxu1 %v543_v45 }
  0xea   :  { %v315_v47 = vpop.f32.mrf.mxu0  ;;  %v358_v48 = vpop.f32.mrf.mxu1 }
  0xeb   :  { %367 = vst [vmem:[%s771_s2] sm:$0xff] %v315_v47  ;;  %369 = vst [vmem:[%s771_s2 + $0x10] sm:$0xff] %v358_v48  ;;  %v400_v53 = vmul.f32 %v315_v47, %v315_v47  ;;  %v402_v54 = vmul.f32 %v358_v48, %v358_v48 }
  0xec   :  { %v317_v49 = vpop.f32.mrf.mxu0  ;;  %v360_v50 = vpop.f32.mrf.mxu1 }
  0xed   :  { %368 = vst [vmem:[%s771_s2 + $0x8] sm:$0xff] %v317_v49  ;;  %v377_v51 = vadd.f32 %v317_v49, %v315_v47  ;;  %v401_v52 = vmul.f32 %v317_v49, %v317_v49  ;;  %370 = vst [vmem:[%s771_s2 + $0x18] sm:$0xff] %v360_v50  ;;  %v403_v4 = vmul.f32 %v360_v50, %v360_v50 }
  0xee   :  { %v319_v55 = vpop.f32.mrf.mxu0  ;;  %v362_v56 = vpop.f32.mrf.mxu1 }
  0xef   :  { %371 = vst [vmem:[%s771_s2 + $0x20] sm:$0x1] %v319_v55  ;;  %v404_v57 = vmul.f32 %v319_v55, %v319_v55  ;;  %373 = vst [vmem:[%s771_s2 + $0x30] sm:$0x1] %v362_v56  ;;  %v378_v60 = vadd.f32 %v377_v51, %v358_v48  ;;  %v408_v61 = vadd.f32 %v401_v52, %v400_v53  ;;  %v383_v62 = vsel %vm382_vm3, %v319_v55, 0.0 }
  0xf0   :  { %v321_v58 = vpop.f32.mrf.mxu0  ;;  %v364_v59 = vpop.f32.mrf.mxu1  ;;  %v406_v63 = vmul.f32 %v362_v56, %v362_v56  ;;  %v386_v7 = vsel %vm382_vm3, %v362_v56, 0.0 }
  0xf1   :  { %372 = vst [vmem:[%s771_s2 + $0x28] sm:$0x1] %v321_v58  ;;  %v384_v0 = vsel %vm382_vm3, %v321_v58, 0.0  ;;  %v405_v1 = vmul.f32 %v321_v58, %v321_v58  ;;  %374 = vst [vmem:[%s771_s2 + $0x38] sm:$0x1] %v364_v59  ;;  %v379_v3 = vadd.f32 %v378_v60, %v360_v50  ;;  %v409_v5 = vadd.f32 %v408_v61, %v402_v54 }
  0xf2   :  { %v385_v2 = vadd.f32 %v384_v0, %v383_v62  ;;  %v413_v6 = vsel %vm382_vm3, %v404_v57, 0.0  ;;  %v407_v9 = vmul.f32 %v364_v59, %v364_v59  ;;  %v388_v13 = vsel %vm382_vm3, %v364_v59, 0.0 }
  0xf3   :  { %v414_v8 = vsel %vm382_vm3, %v405_v1, 0.0  ;;  %380 = vadd.xlane.f32.xlu0 %v379_v3  ;;  %v410_v11 = vadd.f32 %v409_v5, %v403_v4  ;;  %v416_v14 = vsel %vm382_vm3, %v406_v63, 0.0 }
  0xf4   :  { %v415_v10 = vadd.f32 %v414_v8, %v413_v6  ;;  %v387_v12 = vadd.f32 %v386_v7, %v385_v2  ;;  %v418_v17 = vsel %vm382_vm3, %v407_v9, 0.0 }
  0xf5   :  { %411 = vadd.xlane.f32.xlu1 %v410_v11 }
  0xf6   :  { %v389_v15 = vadd.f32 %v388_v13, %v387_v12  ;;  %v417_v16 = vadd.f32 %v416_v14, %v415_v10 }
  0xf8   :  { %390 = vadd.xlane.f32.xlu0 %v389_v15  ;;  %v419_v18 = vadd.f32 %v418_v17, %v417_v16 }
  0xfa   :  { %420 = vadd.xlane.f32.xlu1 %v419_v18 }
 0x17c   :  { %v381_v20 = vpop.xlane.xlu0 %380 }
 0x17d   :  { %v392_v22 = vadd.f32 %v381_v20, %v375_v19 }
 0x17e   :  { %v412_v23 = vpop.xlane.xlu1 %411 }
 0x17f   :  { %395 = vst.msk [vmem:[%s770_s3] sm:$0xff] %vm19_vm2, %v392_v22  ;;  %v422_v25 = vadd.f32 %v412_v23, %v398_v21 }
 0x181   :  { %v391_v26 = vpop.xlane.xlu0 %390  ;;  %424 = vst.msk [vmem:[%s772_s4] sm:$0xff] %vm19_vm2, %v422_v25 }
 0x182   :  { %v393_v28 = vadd.f32 %v391_v26, %v376_v24 }
 0x183   :  { %v421_v29 = vpop.xlane.xlu1 %420 }
 0x184   :  { %397 = vst.msk [vmem:[%s770_s3 + $0x8] sm:$0x1] %vm21_vm4, %v393_v28  ;;  %v423_v30 = vadd.f32 %v421_v29, %v399_v27 }
 0x186   :  { %425 = vst.msk [vmem:[%s772_s4 + $0x8] sm:$0x1] %vm21_vm4, %v423_v30 }

// kernel: _lambda_.5
= control target key start
LH: loop header
LB: loop body
LE: loop exit
PB: predicated region body
PF: predicated region fallthrough
CT: control target
= control target key end

     0   :  { %v100_v0 = vmov 0   ;;  %s151_s1 = inlined_call_operand.vmem [shape: f32[6,1], index: 1, kind: input, shape index: {}]   ;;  %s152_s2 = inlined_call_operand.vmem [shape: f32[6,1], index: 2, kind: input, shape index: {}]   ;;  %s153_s0 = inlined_call_operand.vmem [shape: f32[6,512], index: 0, kind: input, shape index: {}]   ;;  %s154_s3 = inlined_call_operand.vmem [shape: f32[6,512], index: 3, kind: output, shape index: {}]  }
   0x1   :  { %83 = vset.pattern.permute.xlu0 %v100_v0  ;;  %v18_v1 = vld [vmem:[%s151_s1] sm:$0x3f]  ;;  %v15_v5 = vld [vmem:[%s153_s0 + $0x8] sm:$0x3f]  ;;  %v16_v6 = vld [vmem:[%s153_s0 + $0x10] sm:$0x3f] }
   0x2   :  { %21 = vperm.xlu0 %83, %v18_v1   ;;  %v28_v2 = vld [vmem:[%s152_s2] sm:$0x3f]  ;;  %v17_v7 = vld [vmem:[%s153_s0 + $0x18] sm:$0x3f] }
   0x3   :  { %v14_v3 = vld [vmem:[%s153_s0] sm:$0x3f] }
   0x6   :  { %31 = vperm.xlu0 %83, %v28_v2  }
  0x7d   :  { %v22_v4 = vpop.permute.xlu0 %21 }
  0x7e   :  { %v24_v8 = vmul.f32 %v22_v4, %v14_v3  ;;  %v25_v9 = vmul.f32 %v22_v4, %v15_v5  ;;  %v26_v10 = vmul.f32 %v22_v4, %v16_v6  ;;  %v27_v11 = vmul.f32 %v22_v4, %v17_v7 }
  0x81   :  { %v32_v12 = vpop.permute.xlu0 %31 }
  0x82   :  { %v34_v13 = vadd.f32 %v32_v12, %v24_v8  ;;  %v35_v14 = vadd.f32 %v32_v12, %v25_v9  ;;  %v36_v15 = vadd.f32 %v32_v12, %v26_v10  ;;  %v37_v16 = vadd.f32 %v32_v12, %v27_v11 }
  0x84   :  { %v38_v17 = vmin.f32 %v34_v13, 20.0  ;;  %v39_v18 = vmin.f32 %v35_v14, 20.0  ;;  %v40_v19 = vmin.f32 %v36_v15, 20.0  ;;  %v41_v20 = vmin.f32 %v37_v16, 20.0 }
  0x86   :  { %v42_v21 = vmul.f32 1.442695, %v38_v17  ;;  %v44_v22 = vmul.f32 1.442695, %v39_v18  ;;  %v46_v23 = vmul.f32 1.442695, %v40_v19 }
  0x87   :  { %v48_v24 = vmul.f32 1.442695, %v41_v20 }
  0x88   :  { %84 = vpow2.f32 %v42_v21 }
  0x89   :  { %86 = vpow2.f32 %v44_v22 }
  0x8a   :  { %88 = vpow2.f32 %v46_v23 }
  0x8b   :  { %90 = vpow2.f32 %v48_v24 }
  0x95   :  { %v85_v25 = vpop.eup %84 }
  0x96   :  { %v87_v26 = vpop.eup %86  ;;  %v50_v27 = vadd.f32 2.0, %v85_v25 }
  0x97   :  { %v89_v28 = vpop.eup %88  ;;  %v51_v29 = vadd.f32 2.0, %v87_v26 }
  0x98   :  { %v91_v30 = vpop.eup %90  ;;  %v52_v31 = vadd.f32 2.0, %v89_v28  ;;  %v54_v32 = vmul.f32 %v85_v25, %v50_v27 }
  0x99   :  { %v53_v33 = vadd.f32 2.0, %v91_v30  ;;  %v55_v34 = vmul.f32 %v87_v26, %v51_v29 }
  0x9a   :  { %v56_v35 = vmul.f32 %v89_v28, %v52_v31  ;;  %v62_v36 = vadd.f32 2.0, %v54_v32  ;;  %v58_v41 = vmul.f32 %v54_v32, %v34_v13 }
  0x9b   :  { %v57_v37 = vmul.f32 %v91_v30, %v53_v33  ;;  %v63_v38 = vadd.f32 2.0, %v55_v34  ;;  %v59_v43 = vmul.f32 %v55_v34, %v35_v14 }
  0x9c   :  { %v64_v39 = vadd.f32 2.0, %v56_v35  ;;  %92 = vrcp.f32 %v62_v36  ;;  %v60_v45 = vmul.f32 %v56_v35, %v36_v15 }
  0x9d   :  { %v65_v40 = vadd.f32 2.0, %v57_v37  ;;  %94 = vrcp.f32 %v63_v38  ;;  %v61_v48 = vmul.f32 %v57_v37, %v37_v16 }
  0x9e   :  { %96 = vrcp.f32 %v64_v39 }
  0x9f   :  { %98 = vrcp.f32 %v65_v40 }
  0xa9   :  { %v93_v42 = vpop.eup %92 }
  0xaa   :  { %v95_v44 = vpop.eup %94  ;;  %v70_v46 = vmul.f32 %v93_v42, %v58_v41 }
  0xab   :  { %v97_v47 = vpop.eup %96  ;;  %v71_v49 = vmul.f32 %v95_v44, %v59_v43 }
  0xac   :  { %v99_v50 = vpop.eup %98  ;;  %v72_v51 = vmul.f32 %v97_v47, %v60_v45  ;;  %74 = vst [vmem:[%s154_s3] sm:$0x3f] %v70_v46 }
  0xad   :  { %v73_v52 = vmul.f32 %v99_v50, %v61_v48  ;;  %75 = vst [vmem:[%s154_s3 + $0x8] sm:$0x3f] %v71_v49 }
  0xae   :  { %76 = vst [vmem:[%s154_s3 + $0x10] sm:$0x3f] %v72_v51 }
  0xaf   :  { %77 = vst [vmem:[%s154_s3 + $0x18] sm:$0x3f] %v73_v52 }

</bundles_post_ra>
